<compile_context>
chip_gen: v7x
topology: tpu7x:2x2x1
jax: 0.10.0
libtpu: 0.0.40
codegen_flags: <defaults>
</compile_context>

<pallas_src>
import jax
import jax.numpy as jnp
from jax.experimental import pallas as pl
from jax.experimental.pallas import tpu as pltpu

MXU_DTYPE = jnp.bfloat16  # matmul-input dtype; accumulation is always f32


def _make_encoder_kernel(tb, enc_in, pred_len):
    E, P = enc_in, pred_len

    def kernel(x_ref,      # (TB*E, S)  rows = (batch, channel), bf16
               wt1_ref,    # (S, D)     proj_time_1 weight (pre-transposed), bf16
               bt1_ref,    # (1, D)     f32
               wt2_ref,    # (D, P)     proj_time_2 weight (pre-transposed), bf16
               bt2_ref,    # (1, P)     f32
               wd1_ref,    # (D, E)     proj_dim_1 weight (PyTorch layout), bf16
               bd1_ref,    # (D, 1)     f32
               wd2_ref,    # (E, D)     proj_dim_2 weight (PyTorch layout), bf16
               bd2_ref,    # (E, 1)     f32
               o_ref,      # (E, TB*P)  lanes = (batch, pred step), f32
               *scratch):  # optional VMEM scratch (E, TB*P) f32 when tb > 1
        # ---- time projections: batch folded into the matmul M dimension ----
        h = jnp.dot(x_ref[...], wt1_ref[...], preferred_element_type=jnp.float32)
        h = jnp.maximum(h + bt1_ref[...], 0.0)                             # ReLU, f32
        # TODO(synk): dropout is identity in eval mode; training-time dropout not implemented.
        h = jnp.dot(h.astype(MXU_DTYPE), wt2_ref[...],
                    preferred_element_type=jnp.float32) + bt2_ref[...]     # [TB*E, P]

        # ---- permute(0,2,1) back: regroup rows (b,e) x lanes p -> rows e x lanes (b,p)
        #      Static slices + scratch stores only (no in-kernel reshape/transpose). ----
        if tb == 1:
            x2 = h                                                          # already [E, P]
        else:
            x2_scr = scratch[0]
            for b in range(tb):
                x2_scr[:, b * P:(b + 1) * P] = h[b * E:(b + 1) * E, :]
            x2 = x2_scr[...]

        # ---- dim projections in transposed form (weights on the left) so pred_len
        #      stays on the lane axis and the output store is lane-dense ----
        g = jnp.dot(wd1_ref[...], x2.astype(MXU_DTYPE),
                    preferred_element_type=jnp.float32) + bd1_ref[...]      # [D, TB*P]
        g = jnp.maximum(g, 0.0)                                             # ReLU, f32
        out = jnp.dot(wd2_ref[...], g.astype(MXU_DTYPE),
                      preferred_element_type=jnp.float32) + bd2_ref[...]    # [E, TB*P]
        o_ref[...] = out.astype(o_ref.dtype)

    return kernel


def _choose_batch_block(B, E, P):
    """Whole batch in one grid step when small; otherwise an (8,128)-aligned divisor."""
    if B <= 64:
        return B                       # single grid step: no per-step pipeline overhead
    for tb in range(64, 0, -1):        # keep blocks well under VMEM (incl. v7x's 64 MiB)
        if B % tb == 0 and (tb * E) % 8 == 0 and (tb * P) % 128 == 0:
            return tb
    return B                           # fallback: full batch as one block


def mlp_encoder(x_enc, params, pred_len):
    """x_enc: [B, seq_len, enc_in] -> [B, pred_len, enc_in]  (matches Model.encoder)."""
    B, S, E = x_enc.shape
    wt1, bt1, wt2, bt2, wd1, bd1, wd2, bd2 = params
    D = wt1.shape[0]
    P = pred_len
    TB = _choose_batch_block(B, E, P)
    n_blocks = B // TB

    # One-time layout prep in XLA (outside the kernel):
    #   fold batch into rows for the time stage (+ bf16 cast fused into the copy),
    #   pre-transpose weights, 2-D biases.
    x_rows = jnp.transpose(x_enc, (0, 2, 1)).reshape(B * E, S).astype(MXU_DTYPE)
    wt1_t = wt1.T.astype(MXU_DTYPE)      # (S, D)
    wt2_t = wt2.T.astype(MXU_DTYPE)      # (D, P)
    wd1_m = wd1.astype(MXU_DTYPE)        # (D, E)  used as LHS -> no transpose needed
    wd2_m = wd2.astype(MXU_DTYPE)        # (E, D)
    bt1_r = bt1.reshape(1, D)
    bt2_r = bt2.reshape(1, P)
    bd1_c = bd1.reshape(D, 1)
    bd2_c = bd2.reshape(E, 1)

    kernel = _make_encoder_kernel(TB, E, P)
    full = lambda arr: pl.BlockSpec(arr.shape, lambda i: (0,) * arr.ndim)
    scratch_shapes = [] if TB == 1 else [pltpu.VMEM((E, TB * P), jnp.float32)]

    out_t = pl.pallas_call(
        kernel,
        out_shape=jax.ShapeDtypeStruct((E, B * P), x_enc.dtype),
        grid_spec=pltpu.PrefetchScalarGridSpec(
            num_scalar_prefetch=0,
            grid=(n_blocks,),
            in_specs=[
                pl.BlockSpec((TB * E, S), lambda i: (i, 0)),
                full(wt1_t), full(bt1_r),
                full(wt2_t), full(bt2_r),
                full(wd1_m), full(bd1_c),
                full(wd2_m), full(bd2_c),
            ],
            out_specs=pl.BlockSpec((E, TB * P), lambda i: (0, i)),
            scratch_shapes=scratch_shapes,
        ),
        compiler_params=pltpu.CompilerParams(dimension_semantics=("parallel",)),
    )(x_rows, wt1_t, bt1_r, wt2_t, bt2_r, wd1_m, bd1_c, wd2_m, bd2_c)

    # (E, B*P) lane-dense kernel output -> (B, P, E): cheap XLA layout plumbing.
    return jnp.transpose(out_t.reshape(E, B, P), (1, 2, 0))


def init_params(key, seq_len, pred_len, enc_in, d_model):
    """Deterministic init matching nn.Linear shapes (W: [out, in], b: [out])."""
    ks = jax.random.split(key, 8)

    def lin(kw, kb, fan_in, fan_out):
        bound = 1.0 / jnp.sqrt(fan_in)
        w = jax.random.uniform(kw, (fan_out, fan_in), jnp.float32, -bound, bound)
        b = jax.random.uniform(kb, (fan_out,), jnp.float32, -bound, bound)
        return w, b

    wt1, bt1 = lin(ks[0], ks[1], seq_len, d_model)    # proj_time_1
    wt2, bt2 = lin(ks[2], ks[3], d_model, pred_len)   # proj_time_2
    wd1, bd1 = lin(ks[4], ks[5], enc_in, d_model)     # proj_dim_1
    wd2, bd2 = lin(ks[6], ks[7], d_model, enc_in)     # proj_dim_2
    return (wt1, bt1, wt2, bt2, wd1, bd1, wd2, bd2)


def reference_encoder(x, params):
    """Pure-JAX f32 reference of Model.encoder (dropout = identity, eval mode)."""
    wt1, bt1, wt2, bt2, wd1, bd1, wd2, bd2 = params
    h = jnp.transpose(x, (0, 2, 1))
    h = jnp.maximum(h @ wt1.T + bt1, 0.0)
    h = h @ wt2.T + bt2
    h = jnp.transpose(h, (0, 2, 1))
    h = jnp.maximum(h @ wd1.T + bd1, 0.0)
    h = h @ wd2.T + bd2
    return h


if __name__ == "__main__":
    # Small config consistent with the module.
    B, seq_len, pred_len, enc_in, d_model = 2, 16, 8, 4, 32

    key = jax.random.PRNGKey(0)
    k_x, k_p = jax.random.split(key)
    x_enc = jax.random.normal(k_x, (B, seq_len, enc_in), jnp.float32)
    params = init_params(k_p, seq_len, pred_len, enc_in, d_model)

    out = mlp_encoder(x_enc, params, pred_len)
    out = jax.block_until_ready(out)

    ref = reference_encoder(x_enc, params)
    assert out.shape == (B, pred_len, enc_in)
    # bf16 MXU inputs with f32 accumulation -> compare against f32 reference with a
    # correspondingly loosened tolerance.
    assert jnp.allclose(out, ref, atol=2e-2, rtol=2e-2), float(jnp.max(jnp.abs(out - ref)))

    print("KERNEL_OK")
</pallas_src>

<mosaic_0001>
module attributes {stable_mosaic.version = 11 : i64} {
  func.func @kernel(%arg0: i32, %arg1: memref<8x16xbf16, #tpu.memory_space<vmem>>, %arg2: memref<16x32xbf16, #tpu.memory_space<vmem>>, %arg3: memref<1x32xf32, #tpu.memory_space<vmem>>, %arg4: memref<32x8xbf16, #tpu.memory_space<vmem>>, %arg5: memref<1x8xf32, #tpu.memory_space<vmem>>, %arg6: memref<32x4xbf16, #tpu.memory_space<vmem>>, %arg7: memref<32x1xf32, #tpu.memory_space<vmem>>, %arg8: memref<4x32xbf16, #tpu.memory_space<vmem>>, %arg9: memref<4x1xf32, #tpu.memory_space<vmem>>, %arg10: memref<4x16xf32, #tpu.memory_space<vmem>>, %arg11: memref<4x16xf32, #tpu.memory_space<vmem>>) attributes {dimension_semantics = [#tpu.dimension_semantics<parallel>], iteration_bounds = array<i64: 1>, scalar_prefetch = 0 : i64, scratch_operands = 1 : i64, tpu.core_type = #tpu.core_type<tc>, window_params = [{transform_indices = @transform_0, window_bounds = array<i64: 8, 16>}, {pipeline_mode = #tpu.pipeline_mode<synchronous>, transform_indices = @transform_1, window_bounds = array<i64: 16, 32>}, {pipeline_mode = #tpu.pipeline_mode<synchronous>, transform_indices = @transform_2, window_bounds = array<i64: 1, 32>}, {pipeline_mode = #tpu.pipeline_mode<synchronous>, transform_indices = @transform_3, window_bounds = array<i64: 32, 8>}, {pipeline_mode = #tpu.pipeline_mode<synchronous>, transform_indices = @transform_4, window_bounds = array<i64: 1, 8>}, {pipeline_mode = #tpu.pipeline_mode<synchronous>, transform_indices = @transform_5, window_bounds = array<i64: 32, 4>}, {pipeline_mode = #tpu.pipeline_mode<synchronous>, transform_indices = @transform_6, window_bounds = array<i64: 32, 1>}, {pipeline_mode = #tpu.pipeline_mode<synchronous>, transform_indices = @transform_7, window_bounds = array<i64: 4, 32>}, {pipeline_mode = #tpu.pipeline_mode<synchronous>, transform_indices = @transform_8, window_bounds = array<i64: 4, 1>}, {transform_indices = @transform_9, window_bounds = array<i64: 4, 16>}]} {
    %c0 = arith.constant 0 : index
    %c0_0 = arith.constant 0 : index
    %0 = vector.load %arg1[%c0, %c0_0] : memref<8x16xbf16, #tpu.memory_space<vmem>>, vector<8x16xbf16>
    %c0_1 = arith.constant 0 : index
    %c0_2 = arith.constant 0 : index
    %1 = vector.load %arg2[%c0_1, %c0_2] : memref<16x32xbf16, #tpu.memory_space<vmem>>, vector<16x32xbf16>
    %cst = arith.constant dense<0.000000e+00> : vector<8x32xf32>
    %2 = tpu.matmul %0, %1, %cst {dimension_numbers = #tpu.dot_dimension_numbers<[1], [0], [0], [1], [0, 0, 1, 1], [], []>} : vector<8x16xbf16>, vector<16x32xbf16>, vector<8x32xf32> -> vector<8x32xf32>
    %c0_3 = arith.constant 0 : index
    %c0_4 = arith.constant 0 : index
    %3 = vector.load %arg3[%c0_3, %c0_4] : memref<1x32xf32, #tpu.memory_space<vmem>>, vector<1x32xf32>
    %4 = vector.broadcast %3 : vector<1x32xf32> to vector<8x32xf32>
    %5 = arith.addf %2, %4 : vector<8x32xf32>
    %cst_5 = arith.constant 0.000000e+00 : f32
    %6 = vector.broadcast %cst_5 : f32 to vector<8x32xf32>
    %7 = arith.maximumf %5, %6 : vector<8x32xf32>
    %8 = arith.truncf %7 : vector<8x32xf32> to vector<8x32xbf16>
    %c0_6 = arith.constant 0 : index
    %c0_7 = arith.constant 0 : index
    %9 = vector.load %arg4[%c0_6, %c0_7] : memref<32x8xbf16, #tpu.memory_space<vmem>>, vector<32x8xbf16>
    %cst_8 = arith.constant dense<0.000000e+00> : vector<8x8xf32>
    %10 = tpu.matmul %8, %9, %cst_8 {dimension_numbers = #tpu.dot_dimension_numbers<[1], [0], [0], [1], [0, 0, 1, 1], [], []>} : vector<8x32xbf16>, vector<32x8xbf16>, vector<8x8xf32> -> vector<8x8xf32>
    %c0_9 = arith.constant 0 : index
    %c0_10 = arith.constant 0 : index
    %11 = vector.load %arg5[%c0_9, %c0_10] : memref<1x8xf32, #tpu.memory_space<vmem>>, vector<1x8xf32>
    %12 = vector.broadcast %11 : vector<1x8xf32> to vector<8x8xf32>
    %13 = arith.addf %10, %12 : vector<8x8xf32>
    %14 = vector.extract_strided_slice %13 {offsets = [0, 0], sizes = [4, 8], strides = [1, 1]} : vector<8x8xf32> to vector<4x8xf32>
    %c0_11 = arith.constant 0 : index
    %c0_12 = arith.constant 0 : index
    %15 = vector.load %arg11[%c0_11, %c0_12] : memref<4x16xf32, #tpu.memory_space<vmem>>, vector<4x8xf32>
    tpu.vector_store %arg11[%c0_11, %c0_12], %14 {strides = array<i32>} : memref<4x16xf32, #tpu.memory_space<vmem>>, vector<4x8xf32>,
    %16 = vector.extract_strided_slice %13 {offsets = [4, 0], sizes = [4, 8], strides = [1, 1]} : vector<8x8xf32> to vector<4x8xf32>
    %c0_13 = arith.constant 0 : index
    %c8 = arith.constant 8 : index
    %17 = vector.load %arg11[%c0_13, %c8] : memref<4x16xf32, #tpu.memory_space<vmem>>, vector<4x8xf32>
    tpu.vector_store %arg11[%c0_13, %c8], %16 {strides = array<i32>} : memref<4x16xf32, #tpu.memory_space<vmem>>, vector<4x8xf32>,
    %c0_14 = arith.constant 0 : index
    %c0_15 = arith.constant 0 : index
    %18 = vector.load %arg11[%c0_14, %c0_15] : memref<4x16xf32, #tpu.memory_space<vmem>>, vector<4x16xf32>
    %c0_16 = arith.constant 0 : index
    %c0_17 = arith.constant 0 : index
    %19 = vector.load %arg6[%c0_16, %c0_17] : memref<32x4xbf16, #tpu.memory_space<vmem>>, vector<32x4xbf16>
    %20 = arith.truncf %18 : vector<4x16xf32> to vector<4x16xbf16>
    %cst_18 = arith.constant dense<0.000000e+00> : vector<32x16xf32>
    %21 = tpu.matmul %19, %20, %cst_18 {dimension_numbers = #tpu.dot_dimension_numbers<[1], [0], [0], [1], [0, 0, 1, 1], [], []>} : vector<32x4xbf16>, vector<4x16xbf16>, vector<32x16xf32> -> vector<32x16xf32>
    %c0_19 = arith.constant 0 : index
    %c0_20 = arith.constant 0 : index
    %22 = vector.load %arg7[%c0_19, %c0_20] : memref<32x1xf32, #tpu.memory_space<vmem>>, vector<32x1xf32>
    %23 = vector.broadcast %22 : vector<32x1xf32> to vector<32x16xf32>
    %24 = arith.addf %21, %23 : vector<32x16xf32>
    %cst_21 = arith.constant 0.000000e+00 : f32
    %25 = vector.broadcast %cst_21 : f32 to vector<32x16xf32>
    %26 = arith.maximumf %24, %25 : vector<32x16xf32>
    %c0_22 = arith.constant 0 : index
    %c0_23 = arith.constant 0 : index
    %27 = vector.load %arg8[%c0_22, %c0_23] : memref<4x32xbf16, #tpu.memory_space<vmem>>, vector<4x32xbf16>
    %28 = arith.truncf %26 : vector<32x16xf32> to vector<32x16xbf16>
    %cst_24 = arith.constant dense<0.000000e+00> : vector<4x16xf32>
    %29 = tpu.matmul %27, %28, %cst_24 {dimension_numbers = #tpu.dot_dimension_numbers<[1], [0], [0], [1], [0, 0, 1, 1], [], []>} : vector<4x32xbf16>, vector<32x16xbf16>, vector<4x16xf32> -> vector<4x16xf32>
    %c0_25 = arith.constant 0 : index
    %c0_26 = arith.constant 0 : index
    %30 = vector.load %arg9[%c0_25, %c0_26] : memref<4x1xf32, #tpu.memory_space<vmem>>, vector<4x1xf32>
    %31 = vector.broadcast %30 : vector<4x1xf32> to vector<4x16xf32>
    %32 = arith.addf %29, %31 : vector<4x16xf32>
    %c0_27 = arith.constant 0 : index
    %c0_28 = arith.constant 0 : index
    %33 = vector.load %arg10[%c0_27, %c0_28] : memref<4x16xf32, #tpu.memory_space<vmem>>, vector<4x16xf32>
    tpu.vector_store %arg10[%c0_27, %c0_28], %32 {strides = array<i32>} : memref<4x16xf32, #tpu.memory_space<vmem>>, vector<4x16xf32>,
    return
  }
  func.func @transform_0(%arg0: i32) -> (i32, i32) {
    %c0_i32 = arith.constant 0 : i32
    %c0_i32_0 = arith.constant 0 : i32
    return %arg0, %c0_i32 : i32, i32
  }
  func.func @transform_1(%arg0: i32) -> (i32, i32) {
    %c0_i32 = arith.constant 0 : i32
    %c0_i32_0 = arith.constant 0 : i32
    %c0_i32_1 = arith.constant 0 : i32
    return %c0_i32, %c0_i32_0 : i32, i32
  }
  func.func @transform_2(%arg0: i32) -> (i32, i32) {
    %c0_i32 = arith.constant 0 : i32
    %c0_i32_0 = arith.constant 0 : i32
    %c0_i32_1 = arith.constant 0 : i32
    return %c0_i32, %c0_i32_0 : i32, i32
  }
  func.func @transform_3(%arg0: i32) -> (i32, i32) {
    %c0_i32 = arith.constant 0 : i32
    %c0_i32_0 = arith.constant 0 : i32
    %c0_i32_1 = arith.constant 0 : i32
    return %c0_i32, %c0_i32_0 : i32, i32
  }
  func.func @transform_4(%arg0: i32) -> (i32, i32) {
    %c0_i32 = arith.constant 0 : i32
    %c0_i32_0 = arith.constant 0 : i32
    %c0_i32_1 = arith.constant 0 : i32
    return %c0_i32, %c0_i32_0 : i32, i32
  }
  func.func @transform_5(%arg0: i32) -> (i32, i32) {
    %c0_i32 = arith.constant 0 : i32
    %c0_i32_0 = arith.constant 0 : i32
    %c0_i32_1 = arith.constant 0 : i32
    return %c0_i32, %c0_i32_0 : i32, i32
  }
  func.func @transform_6(%arg0: i32) -> (i32, i32) {
    %c0_i32 = arith.constant 0 : i32
    %c0_i32_0 = arith.constant 0 : i32
    %c0_i32_1 = arith.constant 0 : i32
    return %c0_i32, %c0_i32_0 : i32, i32
  }
  func.func @transform_7(%arg0: i32) -> (i32, i32) {
    %c0_i32 = arith.constant 0 : i32
    %c0_i32_0 = arith.constant 0 : i32
    %c0_i32_1 = arith.constant 0 : i32
    return %c0_i32, %c0_i32_0 : i32, i32
  }
  func.func @transform_8(%arg0: i32) -> (i32, i32) {
    %c0_i32 = arith.constant 0 : i32
    %c0_i32_0 = arith.constant 0 : i32
    %c0_i32_1 = arith.constant 0 : i32
    return %c0_i32, %c0_i32_0 : i32, i32
  }
  func.func @transform_9(%arg0: i32) -> (i32, i32) {
    %c0_i32 = arith.constant 0 : i32
    %c0_i32_0 = arith.constant 0 : i32
    return %c0_i32, %arg0 : i32, i32
  }
}

</mosaic_0001>

<bundles_post_ra>
// kernel: tpu_custom_call.1
= control target key start
LH: loop header
LB: loop body
LE: loop exit
PB: predicated region body
PF: predicated region fallthrough
CT: control target
= control target key end

     0   :  { %v431_v1 = vmov 0.0   ;;  %vm50_vm0 = vcmask 130048   ;;  %vm432_vm1 = vmmov 0   ;;  %s555_s0 = inlined_call_operand.vmem [shape: bf16[8,16], index: 0, kind: input, shape index: {}]   ;;  %s556_s1 = inlined_call_operand.vmem [shape: bf16[16,32], index: 1, kind: input, shape index: {}]   ;;  %s557_s2 = inlined_call_operand.vmem [shape: f32[1,32], index: 2, kind: input, shape index: {}]   ;;  %s558_s3 = inlined_call_operand.vmem [shape: bf16[32,8], index: 3, kind: input, shape index: {}]   ;;  %s559_s4 = inlined_call_operand.vmem [shape: f32[1,8], index: 4, kind: input, shape index: {}]   ;;  %s560_s5 = inlined_call_operand.vmem [shape: bf16[32,4], index: 5, kind: input, shape index: {}]   ;;  %s561_s6 = inlined_call_operand.vmem [shape: f32[32,1], index: 6, kind: input, shape index: {}]   ;;  %s562_s7 = inlined_call_operand.vmem [shape: bf16[4,32], index: 7, kind: input, shape index: {}]   ;;  %s563_s8 = inlined_call_operand.vmem [shape: f32[4,1], index: 8, kind: input, shape index: {}]   ;;  %s564_s9 = inlined_call_operand.hbm [shape: f32[4,16], index: 9, kind: output, shape index: {}]  }
   0x1   :  { %v402_v0 = vld [vmem:[%s556_s1] sm:$0xff]   ;;  %366 = vmatprep.subr.bf16.mxu0 %v431_v1  ;;  %372 = vmatprep.subr.bf16.mxu1 %v431_v1 }
   0x2   :  { %v34_v2 = vld [vmem:[%s555_s0] sm:$0xf]  ;;  %367 = vmatpush3.bf16.msra.mxu0 %v402_v0  ;;  %368 = vmatprep.mubr.msk.bf16.mxu0 %vm432_vm1, %v431_v1 }
   0x3   :  { %376 = vmatprep.mubr.msk.bf16.mxu1 %vm432_vm1, %v431_v1 }
   0x4   :  { %14 = vsyncpa [#allocation4], 0  ;;  %v403_v3 = vld [vmem:[%s558_s3] sm:$0xff]   ;;  %v404_v4 = vld [vmem:[%s558_s3 + $0x8] sm:$0xff]   ;;  %vm119_vm2 = vcmask 261120   ;;  %vm163_vm3 = vcmask 60416  }
   0x5   :  { %369 = vmatmul.mubr.msk.bf16.vlgmr.msra.gmra.mrb[0].mxu0 %vm50_vm0, %v34_v2  ;;  %373 = vmatpush3.bf16.msra.mxu1 %v403_v3  ;;  %v343_v5 = vld [vmem:[%s557_s2] ss:$0 sm:$0xff]  ;;  %vm211_vm4 = vcmask 31744   ;;  %s433_s19 = smov 8   ;;  %v178_v20 = vld [vmem:[%s561_s6 + $0x8] sm:$0xff]  ;;  %v434_v21 = vmov 0  }
   0x6   :  { %374 = vmatprep.subr.bf16.mxu1 %v431_v1  ;;  %v346_v13 = vld [vmem:[%s559_s4] ss:$0 sm:$0xff]  ;;  %401 = vset.pattern.permute.xlu1 %v434_v21  ;;  %v179_v23 = vld [vmem:[%s561_s6 + $0x10] sm:$0xff]  ;;  %v180_v25 = vld [vmem:[%s561_s6 + $0x18] sm:$0xff]  ;;  %vm169_vm5 = vcmask 130116   ;;  %vm218_vm6 = vcmask 1041408  }
   0x7   :  { %v405_v17 = vld [vmem:[%s560_s5] sm:$0xff]   ;;  %400 = vset.pattern.permute.xlu0 %v434_v21  ;;  %188 = vperm.xlu1 %401, %v178_v20   ;;  %v406_v30 = vld [vmem:[%s560_s5 + $0x8] sm:$0xff]   ;;  %vm327_vm7 = vcmask 125952  }
   0x8   :  { %382 = vmatprep.mubr.msk.bf16.mxu0 %vm211_vm4, %v405_v17  ;;  %v177_v22 = vld [vmem:[%s561_s6] sm:$0xff] }
   0x9   :  { %375 = vmatpush3.bf16.msra.mxu1 %v404_v4  ;;  %v278_v24 = vld [vmem:[%s563_s8] sm:$0xf]  ;;  %s435_s8 = smov [#allocation3]  }
   0xa   :  { %386 = vmatprep.subr.bf16.mxu1 %v431_v1  ;;  %v275_v49 = vld [vmem:[%s562_s7] sm:$0x3]  ;;  %s335_s10 = sshll.u32 %s435_s8, 4  ;;  %s336_s10 = int_to_ptr.vmem [resolvable:$true] %s335_s10 }
   0xb   :  { %193 = vperm.xlu1 %401, %v179_v23   ;;  %s407_s11 = scalar_lea.vmem %s336_s10, 64  ;;  %p412_p1 = scmp.lt.s32.totalorder %s336_s10, %s336_s10 }
   0xc   :  { %p408_p0 = scmp.ne.s32.totalorder %s336_s10, %s407_s11  ;;  %p413_p2 = scmp.lt.s32.totalorder %s407_s11, %s407_s11 }
   0xe   :  { %p414_p3 = por %p413_p2, %p412_p1 }
   0xf   :  { %198 = vperm.xlu1 %401, %v180_v25  }
  0x10   :  { %p415_p4 = pnand %p414_p3, %p408_p0 }
  0x86   :  { %v189_v31 = vpop.permute.xlu1 %188 }
  0x8a   :  { %v194_v32 = vpop.permute.xlu1 %193 }
  0x8e   :  { %v199_v38 = vpop.permute.xlu1 %198 }
  0xd8   :  { %v88_v6 = vpop.f32.mrb[0].mxu0 }
  0xd9   :  { %v89_v7 = vadd.f32 %v343_v5, %v88_v6  ;;  %v370_v8 = vpop.f32.mrb[1].mxu0 }
  0xda   :  { %v91_v9 = vpop.f32.mrb[2].mxu0 }
  0xdb   :  { %v94_v10 = vmax.f32 %v89_v7, 0.0  ;;  %v371_v11 = vpop.f32.mrb[3].mxu0 }
  0xdd   :  { %v95_v12 = vpack.c.bf16 %v94_v10, %v94_v10 }
  0xdf   :  { %377 = vmatmul.mubr.msk.bf16.vlgmr.msra.gmra.mrb[0].mxu1 %vm119_vm2, %v95_v12 }
  0xe0   :  { %390 = vmatprep.mubr.msk.bf16.mxu1 %vm432_vm1, %v431_v1 }
 0x1b2   :  { %v157_v14 = vpop.f32.mrb[0].mxu1 }
 0x1b3   :  { %v158_v15 = vadd.f32 %v346_v13, %v157_v14  ;;  %v378_v16 = vpop.f32.mrb[1].mxu1 }
 0x1b4   :  { %v160_v18 = vpop.f32.mrb[2].mxu1 }
 0x1b5   :  { %164 = vst.msk [vmem:[#allocation2] sm:$0xf] %vm163_vm3, %v158_v15  ;;  %166 = vrot.lane.b32.xlu0 %v158_v15, %s433_s19  ;;  %v379_v19 = vpop.f32.mrb[3].mxu1 }
 0x1b9   :  { %183 = vperm.xlu0 %400, %v177_v22  }
 0x1bd   :  { %281 = vperm.xlu0 %400, %v278_v24  }
 0x227   :  { %v167_v26 = vpop.permute.xlu0 %166 }
 0x228   :  { %170 = vst.msk [vmem:[#allocation2 - $0x4] sm:$0xf0] %vm169_vm5, %v167_v26 }
 0x22f   :  { %v171_v27 = vld [vmem:[#allocation2] sm:$0xf] }
 0x230   :  { %v176_v28 = vpack.c.bf16 %v171_v27, %v171_v27 }
 0x232   :  { %394 = vmatprep.subr.msk.bf16.mxu0 %vm218_vm6, %v176_v28  ;;  %v220_v29 = vsel %vm218_vm6, %v176_v28, 0 }
 0x233   :  { %381 = vmatpush3.bf16.msra.mxu0 %v220_v29 }
 0x236   :  { %383 = vmatmul.mubr.msk.bf16.vlgmr.msra.gmra.mrb[4].mxu0 %vm211_vm4, %v406_v30 }
 0x238   :  { %v184_v36 = vpop.permute.xlu0 %183 }
 0x23c   :  { %v282_v50 = vpop.permute.xlu0 %281 }
 0x309   :  { %v384_v33 = vpop.f32.mrb[4].mxu0 }
 0x30a   :  { %v265_v34 = vadd.f32 %v384_v33, %v194_v32  ;;  %v256_v35 = vpop.f32.mrb[5].mxu0 }
 0x30b   :  { %v385_v37 = vpop.f32.mrb[6].mxu0  ;;  %v257_v39 = vadd.f32 %v256_v35, %v184_v36 }
 0x30c   :  { %v268_v40 = vadd.f32 %v385_v37, %v199_v38  ;;  %v259_v41 = vpop.f32.mrb[7].mxu0  ;;  %v273_v43 = vmax.f32 %v265_v34, 0.0 }
 0x30d   :  { %v260_v42 = vadd.f32 %v259_v41, %v189_v31  ;;  %v271_v45 = vmax.f32 %v257_v39, 0.0 }
 0x30e   :  { %v274_v44 = vmax.f32 %v268_v40, 0.0 }
 0x30f   :  { %v272_v46 = vmax.f32 %v260_v42, 0.0 }
 0x310   :  { %v277_v47 = vpack.c.bf16 %v274_v44, %v273_v43 }
 0x311   :  { %v276_v48 = vpack.c.bf16 %v272_v46, %v271_v45 }
 0x313   :  { %387 = vmatpush3.bf16.msra.mxu1 %v276_v48 }
 0x314   :  { %388 = vmatprep.subr.bf16.mxu1 %v431_v1 }
 0x317   :  { %389 = vmatpush3.bf16.msra.mxu1 %v277_v47 }
 0x31a   :  { %391 = vmatmul.mubr.msk.bf16.vlgmr.msra.gmra.mrb[4].mxu1 %vm119_vm2, %v275_v49 }
 0x3ed   :  { %v321_v51 = vpop.f32.mrb[4].mxu1 }
 0x3ee   :  { %v322_v52 = vadd.f32 %v321_v51, %v282_v50  ;;  %v392_v53 = vpop.f32.mrb[5].mxu1 }
 0x3ef   :  { %v324_v54 = vpop.f32.mrb[6].mxu1 }
 0x3f0   :  { %v393_v55 = vpop.f32.mrb[7].mxu1  ;;  %328 = vst.msk [vmem:[#allocation3] sm:$0xf] %vm327_vm7, %v322_v52 }
 0x3f1   :  { %418 = shalt.err (!%p415_p4)
}
 0x3f2   :  { %s419_s1 = scalar_lea.hbm %s564_s9, 64 }
 0x3f3   :  { %p420_p5 = scmp.ne.s32.totalorder %s564_s9, %s419_s1  ;;  %p423_p6 = scmp.lt.u32.totalorder %s419_s1, %s564_s9 }
 0x3f5   :  { %p425_p7 = pnand %p423_p6, %p420_p5 }
 0x3f7   :  { %428 = shalt.err (!%p425_p7)
}
 0x3f8   :  { %338 = dma.vmem_to_hbm [thread:$0]  %s336_s10, 64, %s564_s9, [#allocation4]  }
 0x3f9   :  { %429 = dma.done.wait [#allocation4], 64  }
 0x3fa   :  { %430 = vsyncadd [#allocation4], 4294967232 }
 0x3fb   :  { %342 = vsyncpa [#allocation4], 1 }

</bundles_post_ra>
